<compile_context>
chip_gen: v7x
topology: tpu7x:2x2x1
jax: 0.10.0
libtpu: 0.0.40
codegen_flags: <defaults>
</compile_context>

<pallas_src>
import jax
import jax.numpy as jnp
from jax.experimental import pallas as pl
from jax.experimental.pallas import tpu as pltpu


def _round_up(x, m):
    return (x + m - 1) // m * m


def conv5x1_kernel(x_ref, halo_ref, w_ref, b_ref, o_ref):
    """One (batch, time-tile) grid step.

    x_ref    : (TILE_T, C_in)   main rows of the padded input window
    halo_ref : (HALO,  C_in)    next HALO rows (right halo, >= K-1 rows)
    w_ref    : (K*C_in, C_out)  conv weight with the K taps folded into rows
    b_ref    : (1, C_out)       bias (f32)
    o_ref    : (TILE_T, C_out)  output tile
    """
    tile_t, c_in = x_ref.shape
    k = w_ref.shape[0] // c_in

    # (TILE_T + HALO, C_in) window = this tile's rows + its right halo.
    window = jnp.concatenate([x_ref[...], halo_ref[...]], axis=0)

    # im2col: K shifted views concatenated along the channel (lane) axis, so
    # the whole 5-tap conv becomes a single deep MXU contraction.
    cols = [window[tap:tap + tile_t, :] for tap in range(k)]
    im2col = jnp.concatenate(cols, axis=1)                    # (TILE_T, K*C_in)

    acc = jnp.dot(im2col, w_ref[...], preferred_element_type=jnp.float32)
    acc = acc + b_ref[...]
    o_ref[...] = jnp.maximum(acc, 0.0).astype(o_ref.dtype)


def conv5x1(x, weight, bias, *, kernel_size=5, pad_type="both", tile_t=512):
    """Forward pass of the PyTorch Conv5x1 module.

    x      : (B, T, C_in)       (the module permutes to NCW internally)
    weight : (C_out, C_in, K)   PyTorch Conv1d layout
    bias   : (C_out,)
    returns: (B, T, C_out) = relu(conv1d(pad(x)))
    """
    B, T, C_in = x.shape
    C_out, C_in_w, K = weight.shape
    assert C_in_w == C_in and K == kernel_size

    if pad_type == "left":
        pad_l = kernel_size - 1
    else:  # 'both'
        pad_l = kernel_size // 2

    HALO = _round_up(K - 1, 8)                 # right-halo rows (8 for K=5)

    # --- time tile: multiple of 8, bounded so the per-step working set
    #     (x tile, im2col slab, out tile, double-buffered) stays a few MiB.
    itemsize = jnp.dtype(x.dtype).itemsize
    TILE_T = min(_round_up(tile_t, 8), _round_up(T, 8))
    bytes_per_row = K * C_in * 4 + C_in * itemsize + C_out * (itemsize + 4)
    while TILE_T > 8 and TILE_T * bytes_per_row > (12 << 20):
        TILE_T = _round_up(TILE_T // 2, 8)
    T_tiles = pl.cdiv(T, TILE_T)
    T_main = T_tiles * TILE_T

    # --- pad time: left zeros for the conv padding, right zeros so every
    #     TILE_T main block and its HALO-row lookahead block is in bounds.
    T_total = T_main + HALO
    x_pad = jnp.pad(x, ((0, 0), (pad_l, T_total - (pad_l + T)), (0, 0)))

    # weight -> (K*C_in, C_out), rows ordered [tap0 ch0..C_in-1, tap1 ch0.., ...]
    w_mat = jnp.transpose(weight, (2, 1, 0)).reshape(K * C_in, C_out)
    w_mat = w_mat.astype(x.dtype)
    b_2d = bias.reshape(1, C_out).astype(jnp.float32)

    halo_blocks_per_tile = TILE_T // HALO

    # VMEM budget: double-buffered x/halo/out tiles + resident weight/bias +
    # in-kernel temporaries (window, im2col, f32 accumulator).
    vmem_est = (
        2 * (TILE_T + HALO) * C_in * itemsize
        + 2 * TILE_T * C_out * itemsize
        + K * C_in * C_out * itemsize + C_out * 4
        + (TILE_T + HALO) * C_in * itemsize
        + TILE_T * K * C_in * itemsize
        + TILE_T * C_out * 4
    )
    vmem_limit = int(min(max(2 * vmem_est, 16 << 20), 64 << 20))

    cost = pl.CostEstimate(
        flops=2 * B * T * K * C_in * C_out,
        transcendentals=0,
        bytes_accessed=(x.size + B * T * C_out + K * C_in * C_out + C_out)
        * itemsize,
    )

    out = pl.pallas_call(
        conv5x1_kernel,
        out_shape=jax.ShapeDtypeStruct((B, T, C_out), x.dtype),
        grid_spec=pltpu.PrefetchScalarGridSpec(
            num_scalar_prefetch=0,
            grid=(B, T_tiles),
            in_specs=[
                # main rows of this tile's input window
                pl.BlockSpec((None, TILE_T, C_in), lambda b, t: (b, t, 0)),
                # right halo: first HALO rows of the *next* tile
                pl.BlockSpec(
                    (None, HALO, C_in),
                    lambda b, t: (b, (t + 1) * halo_blocks_per_tile, 0),
                ),
                # weight / bias: constant index maps -> stay resident in VMEM
                pl.BlockSpec((K * C_in, C_out), lambda b, t: (0, 0)),
                pl.BlockSpec((1, C_out), lambda b, t: (0, 0)),
            ],
            out_specs=pl.BlockSpec((None, TILE_T, C_out), lambda b, t: (b, t, 0)),
        ),
        compiler_params=pltpu.CompilerParams(
            dimension_semantics=("parallel", "parallel"),
            vmem_limit_bytes=vmem_limit,
        ),
        cost_estimate=cost,
    )(x_pad, x_pad, w_mat, b_2d)
    return out


def conv5x1_ref(x, weight, bias, *, kernel_size=5, pad_type="both"):
    """Pure-JAX reference mirroring the PyTorch module exactly."""
    if pad_type == "left":
        pad_l, pad_r = kernel_size - 1, 0
    else:
        pad_l, pad_r = kernel_size // 2, (kernel_size - 1) // 2
    x_ncw = jnp.transpose(x, (0, 2, 1))                      # (B, C_in, T)
    x_ncw = jnp.pad(x_ncw, ((0, 0), (0, 0), (pad_l, pad_r)))
    y = jax.lax.conv_general_dilated(
        x_ncw, weight,
        window_strides=(1,), padding="VALID",
        dimension_numbers=("NCH", "OIH", "NCH"),
    ) + bias[None, :, None]
    y = jnp.transpose(y, (0, 2, 1))                          # (B, T, C_out)
    return jnp.maximum(y, 0.0)


if __name__ == "__main__":
    K = 5
    key = jax.random.PRNGKey(0)
    kx, kw, kb, kx2 = jax.random.split(key, 4)

    # small deterministic test shapes (PyTorch Conv1d weight layout (C_out, C_in, K))
    B, T, C_in, C_out = 2, 16, 8, 8
    x = jax.random.normal(kx, (B, T, C_in), dtype=jnp.float32)
    weight = jax.random.normal(kw, (C_out, C_in, K), dtype=jnp.float32) * 0.1
    bias = jax.random.normal(kb, (C_out,), dtype=jnp.float32) * 0.1

    # 1) 'both' padding, single time tile
    out = conv5x1(x, weight, bias, kernel_size=K, pad_type="both")
    out = jax.block_until_ready(out)
    ref = conv5x1_ref(x, weight, bias, kernel_size=K, pad_type="both")
    assert out.shape == (B, T, C_out)
    assert jnp.allclose(out, ref, atol=1e-5, rtol=1e-5)

    # 2) 'left' padding (causal)
    out_l = jax.block_until_ready(
        conv5x1(x, weight, bias, kernel_size=K, pad_type="left"))
    ref_l = conv5x1_ref(x, weight, bias, kernel_size=K, pad_type="left")
    assert jnp.allclose(out_l, ref_l, atol=1e-5, rtol=1e-5)

    # 3) multiple time tiles (exercises the cross-tile halo path)
    T2 = 32
    x2 = jax.random.normal(kx2, (B, T2, C_in), dtype=jnp.float32)
    out2 = jax.block_until_ready(
        conv5x1(x2, weight, bias, kernel_size=K, pad_type="both", tile_t=16))
    ref2 = conv5x1_ref(x2, weight, bias, kernel_size=K, pad_type="both")
    assert out2.shape == (B, T2, C_out)
    assert jnp.allclose(out2, ref2, atol=1e-5, rtol=1e-5)

    print("KERNEL_OK")
</pallas_src>

<mosaic_0001>
module attributes {stable_mosaic.version = 11 : i64} {
  func.func @conv5x1_kernel(%arg0: i32, %arg1: i32, %arg2: memref<1x16x8xf32, #tpu.memory_space<vmem>>, %arg3: memref<1x8x8xf32, #tpu.memory_space<vmem>>, %arg4: memref<40x8xf32, #tpu.memory_space<vmem>>, %arg5: memref<1x8xf32, #tpu.memory_space<vmem>>, %arg6: memref<1x16x8xf32, #tpu.memory_space<vmem>>) attributes {dimension_semantics = [#tpu.dimension_semantics<parallel>, #tpu.dimension_semantics<parallel>], iteration_bounds = array<i64: 2, 1>, scalar_prefetch = 0 : i64, scratch_operands = 0 : i64, tpu.core_type = #tpu.core_type<tc>, window_params = [{transform_indices = @transform_0, window_bounds = array<i64: 1, 16, 8>}, {transform_indices = @transform_1, window_bounds = array<i64: 1, 8, 8>}, {pipeline_mode = #tpu.pipeline_mode<synchronous>, transform_indices = @transform_2, window_bounds = array<i64: 40, 8>}, {pipeline_mode = #tpu.pipeline_mode<synchronous>, transform_indices = @transform_3, window_bounds = array<i64: 1, 8>}, {transform_indices = @transform_4, window_bounds = array<i64: 1, 16, 8>}]} {
    %c0 = arith.constant 0 : index
    %c0_0 = arith.constant 0 : index
    %c0_1 = arith.constant 0 : index
    %0 = vector.load %arg2[%c0, %c0_0, %c0_1] : memref<1x16x8xf32, #tpu.memory_space<vmem>>, vector<1x16x8xf32>
    %1 = vector.shape_cast %0 : vector<1x16x8xf32> to vector<16x8xf32>
    %c0_2 = arith.constant 0 : index
    %c0_3 = arith.constant 0 : index
    %c0_4 = arith.constant 0 : index
    %2 = vector.load %arg3[%c0_2, %c0_3, %c0_4] : memref<1x8x8xf32, #tpu.memory_space<vmem>>, vector<1x8x8xf32>
    %3 = vector.shape_cast %2 : vector<1x8x8xf32> to vector<8x8xf32>
    %4 = tpu.concatenate %1, %3 in 0 : vector<16x8xf32>, vector<8x8xf32> -> vector<24x8xf32>
    %5 = vector.extract_strided_slice %4 {offsets = [0, 0], sizes = [16, 8], strides = [1, 1]} : vector<24x8xf32> to vector<16x8xf32>
    %6 = vector.extract_strided_slice %4 {offsets = [1, 0], sizes = [16, 8], strides = [1, 1]} : vector<24x8xf32> to vector<16x8xf32>
    %7 = vector.extract_strided_slice %4 {offsets = [2, 0], sizes = [16, 8], strides = [1, 1]} : vector<24x8xf32> to vector<16x8xf32>
    %8 = vector.extract_strided_slice %4 {offsets = [3, 0], sizes = [16, 8], strides = [1, 1]} : vector<24x8xf32> to vector<16x8xf32>
    %9 = vector.extract_strided_slice %4 {offsets = [4, 0], sizes = [16, 8], strides = [1, 1]} : vector<24x8xf32> to vector<16x8xf32>
    %10 = tpu.concatenate %5, %6, %7, %8, %9 in 1 : vector<16x8xf32>, vector<16x8xf32>, vector<16x8xf32>, vector<16x8xf32>, vector<16x8xf32> -> vector<16x40xf32>
    %c0_5 = arith.constant 0 : index
    %c0_6 = arith.constant 0 : index
    %11 = vector.load %arg4[%c0_5, %c0_6] : memref<40x8xf32, #tpu.memory_space<vmem>>, vector<40x8xf32>
    %cst = arith.constant dense<0.000000e+00> : vector<16x8xf32>
    %12 = tpu.matmul %10, %11, %cst {dimension_numbers = #tpu.dot_dimension_numbers<[1], [0], [0], [1], [0, 0, 1, 1], [], []>} : vector<16x40xf32>, vector<40x8xf32>, vector<16x8xf32> -> vector<16x8xf32>
    %c0_7 = arith.constant 0 : index
    %c0_8 = arith.constant 0 : index
    %13 = vector.load %arg5[%c0_7, %c0_8] : memref<1x8xf32, #tpu.memory_space<vmem>>, vector<1x8xf32>
    %14 = vector.broadcast %13 : vector<1x8xf32> to vector<16x8xf32>
    %15 = arith.addf %12, %14 : vector<16x8xf32>
    %cst_9 = arith.constant 0.000000e+00 : f32
    %16 = vector.broadcast %cst_9 : f32 to vector<16x8xf32>
    %17 = arith.maximumf %15, %16 : vector<16x8xf32>
    %c0_10 = arith.constant 0 : index
    %c0_11 = arith.constant 0 : index
    %c0_12 = arith.constant 0 : index
    %18 = vector.load %arg6[%c0_10, %c0_11, %c0_12] : memref<1x16x8xf32, #tpu.memory_space<vmem>>, vector<1x16x8xf32>
    %19 = vector.shape_cast %18 : vector<1x16x8xf32> to vector<16x8xf32>
    %20 = vector.shape_cast %17 : vector<16x8xf32> to vector<1x16x8xf32>
    tpu.vector_store %arg6[%c0_10, %c0_11, %c0_12], %20 {strides = array<i32>} : memref<1x16x8xf32, #tpu.memory_space<vmem>>, vector<1x16x8xf32>,
    return
  }
  func.func @transform_0(%arg0: i32, %arg1: i32) -> (i32, i32, i32) {
    %c0_i32 = arith.constant 0 : i32
    %c0_i32_0 = arith.constant 0 : i32
    return %arg0, %arg1, %c0_i32 : i32, i32, i32
  }
  func.func @transform_1(%arg0: i32, %arg1: i32) -> (i32, i32, i32) {
    %c1_i32 = arith.constant 1 : i32
    %0 = arith.addi %arg1, %c1_i32 : i32
    %c2_i32 = arith.constant 2 : i32
    %1 = arith.muli %0, %c2_i32 : i32
    %c0_i32 = arith.constant 0 : i32
    %c0_i32_0 = arith.constant 0 : i32
    return %arg0, %1, %c0_i32 : i32, i32, i32
  }
  func.func @transform_2(%arg0: i32, %arg1: i32) -> (i32, i32) {
    %c0_i32 = arith.constant 0 : i32
    %c0_i32_0 = arith.constant 0 : i32
    %c0_i32_1 = arith.constant 0 : i32
    return %c0_i32, %c0_i32_0 : i32, i32
  }
  func.func @transform_3(%arg0: i32, %arg1: i32) -> (i32, i32) {
    %c0_i32 = arith.constant 0 : i32
    %c0_i32_0 = arith.constant 0 : i32
    %c0_i32_1 = arith.constant 0 : i32
    return %c0_i32, %c0_i32_0 : i32, i32
  }
  func.func @transform_4(%arg0: i32, %arg1: i32) -> (i32, i32, i32) {
    %c0_i32 = arith.constant 0 : i32
    %c0_i32_0 = arith.constant 0 : i32
    return %arg0, %arg1, %c0_i32 : i32, i32, i32
  }
}

</mosaic_0001>

<bundles_post_ra>
// kernel: tpu_custom_call.1
= control target key start
LH: loop header
LB: loop body
LE: loop exit
PB: predicated region body
PF: predicated region fallthrough
CT: control target
= control target key end

     0   :  { %s700_s15 = smov 0   ;;  %s702_s16 = smov 0   ;;  %s768_s0 = inlined_call_operand.vmem [shape: f32[2,24,8], index: 0, kind: input, shape index: {}]   ;;  %s769_s1 = inlined_call_operand.vmem [shape: f32[2,24,8], index: 1, kind: input, shape index: {}]   ;;  %s770_s2 = inlined_call_operand.vmem [shape: f32[40,8], index: 2, kind: input, shape index: {}]   ;;  %s771_s3 = inlined_call_operand.vmem [shape: f32[1,8], index: 3, kind: input, shape index: {}]   ;;  %s772_s4 = inlined_call_operand.vmem [shape: f32[2,16,8], index: 4, kind: output, shape index: {}]  }
   0x1   :  { %s704_s17 = smov 0  }
   0x2 LB: > { %s26_s18 = sadd.s32 1, %s665_s16  ;;  %p575_p0 = scmp.ge.s32.totalorder %s669_s17, 1  ;;  %s669_s17 = sphi %s704_s17, %s14_s17   ;;  %s665_s16 = sphi %s702_s16, %s774_s16   ;;  %s661_s15 = sphi %s700_s15, %s773_s15  }
   0x3   : > { %p28_p1 = scmp.ge.s32.totalorder %s26_s18, 2  ;;  %p214_p2 = scmp.lt.s32.totalorder %s669_s17, 3 }
   0x5   : > { %s776_s18 = smov (%p28_p1, %s26_s18), 0  ;;  %p215_p3 = pnand %p575_p0, %p214_p2 }
   0x6   : > { %p267_p4 = scmp.lt.s32.totalorder (!%p215_p3), %s661_s15, 1  ;;  %v368_v0 = vld [vmem:[%s770_s2] sm:$0xff] (!%p215_p3)  ;;  %v369_v1 = vld [vmem:[%s770_s2 + $0x8] sm:$0xff] (!%p215_p3)  ;;  %v370_v3 = vld [vmem:[%s770_s2 + $0x10] sm:$0xff] (!%p215_p3)  ;;  %vm320_vm0 = vcmask (!%p215_p3), 1045504   ;;  %vm308_vm1 = vcmask (!%p215_p3), 1046528  }
   0x7   : > { %218 = sbr.rel (%p215_p3) target bundleno = 369 (0x171), region = 36  ;;  %v608_v2 = vpack.c.bf16 (!%p215_p3), %v369_v1, %v368_v0  ;;  %v371_v4 = vld [vmem:[%s770_s2 + $0x18] sm:$0xff] (!%p215_p3)  ;;  %vm332_vm2 = vcmask (!%p215_p3), 1044480   ;;  %v372_v16 = vld [vmem:[%s770_s2 + $0x20] sm:$0xff] (!%p215_p3)  ;;  %s671_s11 = smov (!%p215_p3), 16   ;;  %vm344_vm3 = vcmask (!%p215_p3), 1043456  }
   0x8   : > { %v612_v5 = vpack.c.bf16 (!%p215_p3), %v371_v4, %v370_v3  ;;  %s672_s12 = smov (!%p215_p3), 8   ;;  %s673_s13 = smov (!%p215_p3), 24   ;;  %vm356_vm4 = vcmask (!%p215_p3), 64512   ;;  %vm359_vm5 = vcmask (!%p215_p3), 130048   ;;  %vm362_vm6 = vcmask (!%p215_p3), 195584  }
   0x9   : > { %609 = vmatprep.subr.bf16.mxu0 (!%p215_p3), %v608_v2  ;;  %s674_s14 = smov (!%p215_p3), 32   ;;  %vm365_vm7 = vcmask (!%p215_p3), 261120   ;;  %vm380_vm8 = vcmask (!%p215_p3), 326656   ;;  %v580_v46 = vld [vmem:[%s771_s3] ss:$0 sm:$0xff] (!%p215_p3) }
   0xa   : > { %611 = vmatpush3.bf16.msra.mxu0 (!%p215_p3), %v608_v2 }
   0xb   : > { %613 = vmatprep.subr.bf16.mxu0 (!%p215_p3), %v612_v5 }
   0xe   : > { %s778_s15 = smov (!%p267_p4, %s661_s15), 1  ;;  %615 = vmatpush3.bf16.msra.mxu0 %v612_v5 }
   0xf   : > { %s616_s27 = smul.u32 24, %s778_s15  ;;  %603 = vmatprep.subr.mxu0 %v372_v16  ;;  %s587_s21 = sshll.u32 %s778_s15, 4 }
  0x10   : > { %s300_s24 = scalar_lea.vmem %s772_s4, %s587_s21 }
  0x11   : > { %s274_s30 = scalar_lea.vmem %s768_s0, %s616_s27  ;;  %s586_s5 = sadd.s32 16, %s616_s27 }
  0x12   : > { %v302_v6 = vld [vmem:[%s274_s30] sm:$0xff]  ;;  %v303_v7 = vld [vmem:[%s274_s30 + $0x8] sm:$0xff]  ;;  %s289_s8 = scalar_lea.vmem %s769_s1, %s586_s5  ;;  %604 = vmatpush3.msra.mxu0 %v372_v16 }
  0x13   : > { %v321_v8 = vrot.slane %v302_v6, 2  ;;  %v322_v9 = vrot.slane %v303_v7, 2  ;;  %v309_v10 = vrot.slane %v302_v6, 1  ;;  %v310_v11 = vrot.slane %v303_v7, 1  ;;  %v304_v12 = vld [vmem:[%s289_s8] sm:$0xff] }
  0x14   : > { %v324_v13 = vrot.slane %v304_v12, 2  ;;  %v333_v14 = vrot.slane %v302_v6, 3  ;;  %v334_v15 = vrot.slane %v303_v7, 3  ;;  %v336_v21 = vrot.slane %v304_v12, 3 }
  0x15   : > { %v323_v17 = vsel %vm320_vm0, %v321_v8, %v322_v9  ;;  %v311_v18 = vsel %vm308_vm1, %v309_v10, %v310_v11  ;;  %v312_v22 = vrot.slane %v304_v12, 1  ;;  %v346_v23 = vrot.slane %v303_v7, 4 }
  0x16   : > { %326 = vrot.lane.b32.xlu1 %v323_v17, %s671_s11  ;;  %314 = vrot.lane.b32.xlu0 %v311_v18, %s672_s12  ;;  %v325_v19 = vsel %vm320_vm0, %v322_v9, %v324_v13  ;;  %v335_v20 = vsel %vm332_vm2, %v333_v14, %v334_v15  ;;  %v337_v24 = vsel %vm332_vm2, %v334_v15, %v336_v21  ;;  %v348_v26 = vrot.slane %v304_v12, 4 }
  0x17   : > { %v313_v25 = vsel %vm308_vm1, %v310_v11, %v312_v22  ;;  %v345_v27 = vrot.slane %v302_v6, 4 }
  0x18   : > { %v349_v28 = vsel %vm344_vm3, %v346_v23, %v348_v26 }
  0x19   : > { %v347_v29 = vsel %vm344_vm3, %v345_v27, %v346_v23 }
  0x1a   : > { %328 = vrot.lane.b32.xlu1 %v325_v19, %s671_s11  ;;  %338 = vrot.lane.b32.xlu0 %v335_v20, %s673_s13 }
  0x1e   : > { %340 = vrot.lane.b32.xlu1 %v337_v24, %s673_s13  ;;  %316 = vrot.lane.b32.xlu0 %v313_v25, %s672_s12 }
  0x22   : > { %352 = vrot.lane.b32.xlu1 %v349_v28, %s674_s14  ;;  %350 = vrot.lane.b32.xlu0 %v347_v29, %s674_s14 }
  0x88   : > { %v327_v30 = vpop.permute.xlu1 %326  ;;  %v315_v31 = vpop.permute.xlu0 %314 }
  0x89   : > { %v357_v34 = vsel %vm356_vm4, %v302_v6, %v315_v31 }
  0x8a   : > { %v360_v39 = vsel %vm359_vm5, %v357_v34, %v327_v30 }
  0x8c   : > { %v329_v32 = vpop.permute.xlu1 %328  ;;  %v339_v33 = vpop.permute.xlu0 %338 }
  0x8d   : > { %v363_v41 = vsel %vm362_vm6, %v360_v39, %v339_v33 }
  0x90   : > { %v341_v35 = vpop.permute.xlu1 %340  ;;  %v317_v36 = vpop.permute.xlu0 %316 }
  0x91   : > { %v358_v37 = vsel %vm356_vm4, %v303_v7, %v317_v36 }
  0x92   : > { %v361_v38 = vsel %vm359_vm5, %v358_v37, %v329_v32 }
  0x93   : > { %v364_v40 = vsel %vm362_vm6, %v361_v38, %v341_v35 }
  0x94   : > { %v353_v42 = vpop.permute.xlu1 %352  ;;  %v351_v43 = vpop.permute.xlu0 %350 }
  0x95   : > { %v367_v44 = vsel %vm365_vm7, %v364_v40, %v353_v42  ;;  %v366_v45 = vsel %vm365_vm7, %v363_v41, %v351_v43 }
  0x96   : > { %605 = vmatprep.mubr.msk.f32.mxu0 %vm380_vm8, %v366_v45 }
  0x97   : > { %606 = vmatmul.mubr.msk.f32.vlgmr.msra.gmra.mrb[0].mxu0 %vm380_vm8, %v367_v44 }
 0x16a   : > { %v607_v47 = vpop.f32.mrb[0].mxu0 }
 0x16b   : > { %v459_v48 = vadd.f32 %v607_v47, %v580_v46  ;;  %v453_v49 = vpop.f32.mrb[1].mxu0 }
 0x16c   : > { %v454_v50 = vadd.f32 %v580_v46, %v453_v49 }
 0x16d   : > { %v463_v51 = vmax.f32 %v459_v48, 0.0 }
 0x16e   : > { %v462_v52 = vmax.f32 %v454_v50, 0.0 }
 0x16f   : > { %465 = vst.msk [vmem:[%s300_s24 + $0x8] sm:$0xff] %vm356_vm4, %v463_v51 }
 0x170   : > { %464 = vst.msk [vmem:[%s300_s24] sm:$0xff] %vm356_vm4, %v462_v52 }
 0x171 PF: > { %s14_s17 = sadd.s32 1, %s669_s17   ;;  %s773_s15 = smov %s665_s16 }
 0x172   : > { %p11_p5 = scmp.ge.s32.totalorder %s14_s17, 4   ;;  %s774_s16 = smov %s776_s18 }
 0x174   :  { %13 = sbr.rel (!%p11_p5) target bundleno = 2 (0x2), region = 69 }

</bundles_post_ra>
